<compile_context>
chip_gen: v7x
topology: tpu7x:2x2x1
jax: 0.10.0
libtpu: 0.0.40
codegen_flags: <defaults>
</compile_context>

<pallas_src>
import functools
from math import ceil

import jax
import jax.numpy as jnp
from jax import lax
from jax.experimental import pallas as pl
from jax.experimental.pallas import tpu as pltpu

# --------------------------------------------------------------------------
# Problem definition (from the PyTorch module)
# --------------------------------------------------------------------------
EDGES = [(1, 0), (2, 0), (2, 1), (3, 0), (3, 1), (3, 2), (4, 0), (5, 0), (6, 0),
         (6, 4), (6, 5), (7, 0), (7, 1), (7, 2), (7, 3), (8, 0), (8, 2), (9, 2),
         (10, 0), (10, 4), (10, 5), (11, 0), (12, 0), (12, 3), (13, 0), (13, 1),
         (13, 2), (13, 3), (16, 5), (16, 6), (17, 0), (17, 1), (19, 0), (19, 1),
         (21, 0), (21, 1), (25, 23), (25, 24), (27, 2), (27, 23), (27, 24),
         (28, 2), (29, 23), (29, 26), (30, 1), (30, 8), (31, 0), (31, 24),
         (31, 25), (31, 28), (32, 2), (32, 8), (32, 14), (32, 15), (32, 18),
         (32, 20), (32, 22), (32, 23), (32, 29), (32, 30), (32, 31), (33, 8),
         (33, 9), (33, 13), (33, 14), (33, 15), (33, 18), (33, 19), (33, 20),
         (33, 22), (33, 23), (33, 26), (33, 27), (33, 28), (33, 29), (33, 30),
         (33, 31), (33, 32)]

T_TOTAL = 1.0
TAU = 0.1
STEPS = ceil(T_TOTAL / TAU)          # 10 diffusion steps

NUM_NODES = 34                       # karate club
N_PAD = 64                           # padded node count (multiple of 8)

INPUT_DIM = 16
HIDDEN_DIM = 32
NUM_CLASSES = 4
D_K = 8

LANES = 128                          # lane width of the packed slab

# --------------------------------------------------------------------------
# Packed slab layout: a single (SLAB_ROWS, 128) f32 array holding ALL inputs.
#   rows [0,64)    lanes [0,64)   : edge mask (N_PAD x N_PAD)
#                  lanes [64,80)  : x_in      (N_PAD x INPUT_DIM)
#   rows [64,80)   lanes [0,32)   : We                    (INPUT_DIM, HIDDEN)
#   rows [80,112)  lanes [0,16)   : [Wk | Wq * (1/d_k)]   (HIDDEN, 2*D_K)
#   rows [112,144) lanes [0,128)  : Wd zero-padded        (HIDDEN, LANES)
#   row  144       lanes [0,32)   : be ; lanes [32,48): [bk | bq * (1/d_k)]
#   row  152       lanes [0,128)  : bd zero-padded
# Every row block starts on a sublane (8-row) boundary.
# --------------------------------------------------------------------------
OFF_MX = 0
OFF_WE = OFF_MX + N_PAD              # 64
OFF_WKQ = OFF_WE + INPUT_DIM         # 80
OFF_WD = OFF_WKQ + HIDDEN_DIM        # 112
OFF_B = OFF_WD + HIDDEN_DIM          # 144 (be + bkq share one row)
OFF_BD = OFF_B + 8                   # 152
SLAB_ROWS = OFF_BD + 8               # 160


# --------------------------------------------------------------------------
# Pallas kernel: entire GRAND forward pass, whole-VMEM-resident, no grid.
# --------------------------------------------------------------------------
def grand_kernel(tau, steps, slab_ref, out_ref):
    f32 = jnp.float32
    bf16 = jnp.bfloat16

    # ---- static slices of the single packed input slab --------------------
    mask = slab_ref[OFF_MX:OFF_MX + N_PAD, 0:N_PAD]                    # (64,64)
    x_in = slab_ref[OFF_MX:OFF_MX + N_PAD, N_PAD:N_PAD + INPUT_DIM]    # (64,16)
    we = slab_ref[OFF_WE:OFF_WE + INPUT_DIM, 0:HIDDEN_DIM]             # (16,32)
    wkq = slab_ref[OFF_WKQ:OFF_WKQ + HIDDEN_DIM, 0:2 * D_K]            # (32,16)
    wd = slab_ref[OFF_WD:OFF_WD + HIDDEN_DIM, :]                       # (32,128)
    be = slab_ref[OFF_B:OFF_B + 1, 0:HIDDEN_DIM]                       # (1,32)
    bkq = slab_ref[OFF_B:OFF_B + 1, HIDDEN_DIM:HIDDEN_DIM + 2 * D_K]   # (1,16)
    bd = slab_ref[OFF_BD:OFF_BD + 1, :]                                # (1,128)

    # encoder: x0 = x_in @ We + be   (bf16 MXU operands, f32 accumulation)
    # NOTE: padded rows 34..63 of x_in are zero, so x0 pad rows equal `be`
    # (nonzero garbage).  This is benign: the mask has zero coupling from
    # padded columns into real rows, and the wrapper slices pad rows away.
    x0 = jnp.dot(x_in.astype(bf16), we.astype(bf16),
                 preferred_element_type=f32) + be

    # fused K/Q projection: one (64,32)x(32,16) matmul, then lane slices.
    kq = jnp.dot(x0.astype(bf16), wkq.astype(bf16),
                 preferred_element_type=f32) + bkq
    k = kq[:, 0:D_K]
    q = kq[:, D_K:2 * D_K]          # 1/d_k already folded into Wq / bq

    # scores[u, v] = <K[u], Q[v]> / d_k      (scale pre-folded into q)
    scores = lax.dot_general(k.astype(bf16), q.astype(bf16),
                             (((1,), (1,)), ((), ())),
                             preferred_element_type=f32)

    # edge-masked exponential attention; masking inside the exp keeps masked
    # positions overflow-proof (exp(0)*0 == 0, never inf*0).
    a = jnp.exp(scores * mask) * mask

    # row normalization with tau folded into the per-row scale.  Exact f32
    # reciprocal on a (64,1) vector is ~free and avoids amplifying
    # approx-reciprocal error through U^steps.
    row_sums = jnp.sum(a, axis=1, keepdims=True)
    safe_sums = jnp.where(row_sums == 0.0, 1.0, row_sums)
    a_scaled = a * (tau / safe_sums)                    # = tau * A

    # U = (1 - tau) * I + tau * A ; diagonal built directly (no extra mul).
    rows = lax.broadcasted_iota(jnp.int32, (N_PAD, N_PAD), 0)
    cols = lax.broadcasted_iota(jnp.int32, (N_PAD, N_PAD), 1)
    u = jnp.where(rows == cols, 1.0 - tau, 0.0) + a_scaled

    # explicit-Euler diffusion x_k = U^steps @ x0 via trace-time binary
    # exponentiation applied to the feature matrix: only the squarings
    # (U^2, U^4, U^8) sit on the serial MXU critical path; the feature
    # applies (y = U^2 @ x0, xk = U^8 @ y) are smaller and fill the gaps.
    # The U chain stays f32 (accuracy-sensitive repeated squaring).
    vec = x0
    base = u
    n = steps
    while True:
        if n & 1:
            vec = jnp.dot(base, vec, preferred_element_type=f32)
        n >>= 1
        if n == 0:
            break
        base = jnp.dot(base, base, preferred_element_type=f32)

    # decoder; lane-dense (64,128) store, real logits are cols [:NUM_CLASSES]
    out_ref[...] = jnp.dot(vec.astype(bf16), wd.astype(bf16),
                           preferred_element_type=f32) + bd


# --------------------------------------------------------------------------
# Host-side packing of every input into the single slab (runs outside jit).
# --------------------------------------------------------------------------
def pack_inputs(x_pad, mask, params):
    slab = jnp.zeros((SLAB_ROWS, LANES), dtype=jnp.float32)
    slab = slab.at[OFF_MX:OFF_MX + N_PAD, 0:N_PAD].set(mask)
    slab = slab.at[OFF_MX:OFF_MX + N_PAD, N_PAD:N_PAD + INPUT_DIM].set(x_pad)
    slab = slab.at[OFF_WE:OFF_WE + INPUT_DIM, 0:HIDDEN_DIM].set(params["we"])
    slab = slab.at[OFF_WKQ:OFF_WKQ + HIDDEN_DIM, 0:D_K].set(params["wk"])
    slab = slab.at[OFF_WKQ:OFF_WKQ + HIDDEN_DIM, D_K:2 * D_K].set(
        params["wq"] / float(D_K))                       # fold 1/d_k
    slab = slab.at[OFF_WD:OFF_WD + HIDDEN_DIM, 0:NUM_CLASSES].set(params["wd"])
    slab = slab.at[OFF_B, 0:HIDDEN_DIM].set(params["be"][0])
    slab = slab.at[OFF_B, HIDDEN_DIM:HIDDEN_DIM + D_K].set(params["bk"][0])
    slab = slab.at[OFF_B, HIDDEN_DIM + D_K:HIDDEN_DIM + 2 * D_K].set(
        params["bq"][0] / float(D_K))                    # fold 1/d_k
    slab = slab.at[OFF_BD, 0:NUM_CLASSES].set(params["bd"][0])
    return slab


@jax.jit
def grand_forward(slab):
    """slab: (SLAB_ROWS, 128) f32 packed [mask | x | weights | biases]."""
    vmem = pl.BlockSpec(memory_space=pltpu.MemorySpace.VMEM)
    kernel = functools.partial(grand_kernel, TAU, STEPS)
    out_padded = pl.pallas_call(
        kernel,
        out_shape=jax.ShapeDtypeStruct((N_PAD, LANES), jnp.float32),
        in_specs=[vmem],
        out_specs=vmem,
        cost_estimate=pl.CostEstimate(
            flops=2_850_000,
            transcendentals=N_PAD * N_PAD,
            bytes_accessed=(SLAB_ROWS + N_PAD) * LANES * 4),
    )(slab)
    return out_padded[:, :NUM_CLASSES]


# --------------------------------------------------------------------------
# Pure-JAX reference (mirrors the PyTorch semantics) for verification.
# --------------------------------------------------------------------------
def grand_reference(x_in, mask, params, n):
    x = x_in[:n]
    m = mask[:n, :n]
    x0 = x @ params["we"] + params["be"][0]
    k = x0 @ params["wk"] + params["bk"][0]
    q = x0 @ params["wq"] + params["bq"][0]
    s = (k @ q.T) / float(D_K)
    a = jnp.where(m > 0.0, jnp.exp(s), 0.0)
    rs = a.sum(axis=1, keepdims=True)
    a = a / jnp.where(rs == 0.0, 1.0, rs)
    eye = jnp.eye(n, dtype=jnp.float32)
    u = eye + TAU * (a - eye)
    xk = x0
    for _ in range(STEPS):
        xk = u @ xk
    return xk @ params["wd"] + params["bd"][0]


# --------------------------------------------------------------------------
# Deterministic parameter / input construction.
# --------------------------------------------------------------------------
def make_params(key):
    ks = jax.random.split(key, 8)
    scale = 0.1

    def w(k, shape):
        return (scale * jax.random.normal(k, shape)).astype(jnp.float32)

    return {
        # stored as (in_features, out_features), biases as (1, out_features)
        "we": w(ks[0], (INPUT_DIM, HIDDEN_DIM)),
        "be": w(ks[1], (1, HIDDEN_DIM)),
        "wk": w(ks[2], (HIDDEN_DIM, D_K)),
        "bk": w(ks[3], (1, D_K)),
        "wq": w(ks[4], (HIDDEN_DIM, D_K)),
        "bq": w(ks[5], (1, D_K)),
        "wd": w(ks[6], (HIDDEN_DIM, NUM_CLASSES)),
        "bd": w(ks[7], (1, NUM_CLASSES)),
    }


def make_edge_mask():
    mask = jnp.zeros((N_PAD, N_PAD), dtype=jnp.float32)
    us = jnp.array([u for u, _ in EDGES], dtype=jnp.int32)
    vs = jnp.array([v for _, v in EDGES], dtype=jnp.int32)
    return mask.at[us, vs].set(1.0)


if __name__ == "__main__":
    key = jax.random.PRNGKey(0)
    k_x, k_p = jax.random.split(key)

    params = make_params(k_p)
    x_nodes = jax.random.normal(k_x, (NUM_NODES, INPUT_DIM), dtype=jnp.float32)
    x_pad = jnp.zeros((N_PAD, INPUT_DIM), dtype=jnp.float32).at[:NUM_NODES].set(x_nodes)
    mask = make_edge_mask()
    slab = pack_inputs(x_pad, mask, params)

    out_pad = jax.block_until_ready(grand_forward(slab))
    out = out_pad[:NUM_NODES]                       # (34, NUM_CLASSES)

    ref = grand_reference(x_pad, mask, params, NUM_NODES)
    assert out.shape == (NUM_NODES, NUM_CLASSES)
    # Tolerance covers bf16 MXU-operand rounding on the encoder / K-Q /
    # scores / decoder dots (the U^k chain and row normalization are exact
    # f32, so repeated squaring does not amplify quantization error).
    assert jnp.allclose(out, ref, atol=1e-2, rtol=1e-2), "mismatch vs reference"

    print("KERNEL_OK")
</pallas_src>

<mosaic_0001>
module attributes {stable_mosaic.version = 11 : i64} {
  func.func @grand_kernel(%arg0: memref<160x128xf32, #tpu.memory_space<vmem>>, %arg1: memref<64x128xf32, #tpu.memory_space<vmem>>) attributes {dimension_semantics = [], scalar_prefetch = 0 : i64, scratch_operands = 0 : i64, tpu.core_type = #tpu.core_type<tc>} {
    %c0 = arith.constant 0 : index
    %c0_0 = arith.constant 0 : index
    %0 = vector.load %arg0[%c0, %c0_0] : memref<160x128xf32, #tpu.memory_space<vmem>>, vector<64x64xf32>
    %c0_1 = arith.constant 0 : index
    %c64 = arith.constant 64 : index
    %1 = vector.load %arg0[%c0_1, %c64] : memref<160x128xf32, #tpu.memory_space<vmem>>, vector<64x16xf32>
    %c64_2 = arith.constant 64 : index
    %c0_3 = arith.constant 0 : index
    %2 = vector.load %arg0[%c64_2, %c0_3] : memref<160x128xf32, #tpu.memory_space<vmem>>, vector<16x32xf32>
    %c80 = arith.constant 80 : index
    %c0_4 = arith.constant 0 : index
    %3 = vector.load %arg0[%c80, %c0_4] : memref<160x128xf32, #tpu.memory_space<vmem>>, vector<32x16xf32>
    %c112 = arith.constant 112 : index
    %c0_5 = arith.constant 0 : index
    %4 = vector.load %arg0[%c112, %c0_5] : memref<160x128xf32, #tpu.memory_space<vmem>>, vector<32x128xf32>
    %c144 = arith.constant 144 : index
    %c0_6 = arith.constant 0 : index
    %5 = vector.load %arg0[%c144, %c0_6] : memref<160x128xf32, #tpu.memory_space<vmem>>, vector<1x32xf32>
    %c144_7 = arith.constant 144 : index
    %c32 = arith.constant 32 : index
    %6 = vector.load %arg0[%c144_7, %c32] : memref<160x128xf32, #tpu.memory_space<vmem>>, vector<1x16xf32>
    %c152 = arith.constant 152 : index
    %c0_8 = arith.constant 0 : index
    %7 = vector.load %arg0[%c152, %c0_8] : memref<160x128xf32, #tpu.memory_space<vmem>>, vector<1x128xf32>
    %8 = arith.truncf %1 : vector<64x16xf32> to vector<64x16xbf16>
    %9 = arith.truncf %2 : vector<16x32xf32> to vector<16x32xbf16>
    %cst = arith.constant dense<0.000000e+00> : vector<64x32xf32>
    %10 = tpu.matmul %8, %9, %cst {dimension_numbers = #tpu.dot_dimension_numbers<[1], [0], [0], [1], [0, 0, 1, 1], [], []>} : vector<64x16xbf16>, vector<16x32xbf16>, vector<64x32xf32> -> vector<64x32xf32>
    %11 = vector.broadcast %5 : vector<1x32xf32> to vector<64x32xf32>
    %12 = arith.addf %10, %11 : vector<64x32xf32>
    %13 = arith.truncf %12 : vector<64x32xf32> to vector<64x32xbf16>
    %14 = arith.truncf %3 : vector<32x16xf32> to vector<32x16xbf16>
    %cst_9 = arith.constant dense<0.000000e+00> : vector<64x16xf32>
    %15 = tpu.matmul %13, %14, %cst_9 {dimension_numbers = #tpu.dot_dimension_numbers<[1], [0], [0], [1], [0, 0, 1, 1], [], []>} : vector<64x32xbf16>, vector<32x16xbf16>, vector<64x16xf32> -> vector<64x16xf32>
    %16 = vector.broadcast %6 : vector<1x16xf32> to vector<64x16xf32>
    %17 = arith.addf %15, %16 : vector<64x16xf32>
    %18 = vector.extract_strided_slice %17 {offsets = [0, 0], sizes = [64, 8], strides = [1, 1]} : vector<64x16xf32> to vector<64x8xf32>
    %19 = vector.extract_strided_slice %17 {offsets = [0, 8], sizes = [64, 8], strides = [1, 1]} : vector<64x16xf32> to vector<64x8xf32>
    %20 = arith.truncf %18 : vector<64x8xf32> to vector<64x8xbf16>
    %21 = arith.truncf %19 : vector<64x8xf32> to vector<64x8xbf16>
    %cst_10 = arith.constant dense<0.000000e+00> : vector<64x64xf32>
    %22 = tpu.matmul %20, %21, %cst_10 {dimension_numbers = #tpu.dot_dimension_numbers<[1], [1], [0], [0], [0, 0, 1, 0], [], []>} : vector<64x8xbf16>, vector<64x8xbf16>, vector<64x64xf32> -> vector<64x64xf32>
    %23 = arith.mulf %22, %0 : vector<64x64xf32>
    %24 = math.exp %23 : vector<64x64xf32>
    %25 = arith.mulf %24, %0 : vector<64x64xf32>
    %cst_11 = arith.constant dense<0.000000e+00> : vector<64xf32>
    %26 = vector.multi_reduction <add>, %25, %cst_11 [1] : vector<64x64xf32> to vector<64xf32>
    %27 = vector.shape_cast %26 : vector<64xf32> to vector<64x1xf32>
    %cst_12 = arith.constant 0.000000e+00 : f32
    %28 = vector.broadcast %cst_12 : f32 to vector<64x1xf32>
    %29 = arith.cmpf oeq, %27, %28 : vector<64x1xf32>
    %cst_13 = arith.constant 1.000000e+00 : f32
    %30 = vector.broadcast %cst_13 : f32 to vector<64x1xf32>
    %31 = arith.select %29, %30, %27 : vector<64x1xi1>, vector<64x1xf32>
    %cst_14 = arith.constant 1.000000e-01 : f32
    %32 = vector.broadcast %cst_14 : f32 to vector<64x1xf32>
    %33 = arith.divf %32, %31 : vector<64x1xf32>
    %34 = vector.broadcast %33 : vector<64x1xf32> to vector<64x64xf32>
    %35 = arith.mulf %25, %34 : vector<64x64xf32>
    %36 = tpu.iota {dimensions = array<i32: 0>} : vector<64x64xi32>
    %37 = tpu.iota {dimensions = array<i32: 1>} : vector<64x64xi32>
    %38 = arith.cmpi eq, %36, %37 : vector<64x64xi32>
    %cst_15 = arith.constant 0.899999976 : f32
    %cst_16 = arith.constant 0.000000e+00 : f32
    %39 = vector.broadcast %cst_15 : f32 to vector<64x64xf32>
    %40 = vector.broadcast %cst_16 : f32 to vector<64x64xf32>
    %41 = arith.select %38, %39, %40 : vector<64x64xi1>, vector<64x64xf32>
    %42 = arith.addf %41, %35 : vector<64x64xf32>
    %cst_17 = arith.constant dense<0.000000e+00> : vector<64x64xf32>
    %43 = tpu.matmul %42, %42, %cst_17 {dimension_numbers = #tpu.dot_dimension_numbers<[1], [0], [0], [1], [0, 0, 1, 1], [], []>} : vector<64x64xf32>, vector<64x64xf32>, vector<64x64xf32> -> vector<64x64xf32>
    %cst_18 = arith.constant dense<0.000000e+00> : vector<64x32xf32>
    %44 = tpu.matmul %43, %12, %cst_18 {dimension_numbers = #tpu.dot_dimension_numbers<[1], [0], [0], [1], [0, 0, 1, 1], [], []>} : vector<64x64xf32>, vector<64x32xf32>, vector<64x32xf32> -> vector<64x32xf32>
    %cst_19 = arith.constant dense<0.000000e+00> : vector<64x64xf32>
    %45 = tpu.matmul %43, %43, %cst_19 {dimension_numbers = #tpu.dot_dimension_numbers<[1], [0], [0], [1], [0, 0, 1, 1], [], []>} : vector<64x64xf32>, vector<64x64xf32>, vector<64x64xf32> -> vector<64x64xf32>
    %cst_20 = arith.constant dense<0.000000e+00> : vector<64x64xf32>
    %46 = tpu.matmul %45, %45, %cst_20 {dimension_numbers = #tpu.dot_dimension_numbers<[1], [0], [0], [1], [0, 0, 1, 1], [], []>} : vector<64x64xf32>, vector<64x64xf32>, vector<64x64xf32> -> vector<64x64xf32>
    %cst_21 = arith.constant dense<0.000000e+00> : vector<64x32xf32>
    %47 = tpu.matmul %46, %44, %cst_21 {dimension_numbers = #tpu.dot_dimension_numbers<[1], [0], [0], [1], [0, 0, 1, 1], [], []>} : vector<64x64xf32>, vector<64x32xf32>, vector<64x32xf32> -> vector<64x32xf32>
    %48 = arith.truncf %47 : vector<64x32xf32> to vector<64x32xbf16>
    %49 = arith.truncf %4 : vector<32x128xf32> to vector<32x128xbf16>
    %cst_22 = arith.constant dense<0.000000e+00> : vector<64x128xf32>
    %50 = tpu.matmul %48, %49, %cst_22 {dimension_numbers = #tpu.dot_dimension_numbers<[1], [0], [0], [1], [0, 0, 1, 1], [], []>} : vector<64x32xbf16>, vector<32x128xbf16>, vector<64x128xf32> -> vector<64x128xf32>
    %51 = vector.broadcast %7 : vector<1x128xf32> to vector<64x128xf32>
    %52 = arith.addf %50, %51 : vector<64x128xf32>
    %c0_23 = arith.constant 0 : index
    %c0_24 = arith.constant 0 : index
    %53 = vector.load %arg1[%c0_23, %c0_24] : memref<64x128xf32, #tpu.memory_space<vmem>>, vector<64x128xf32>
    tpu.vector_store %arg1[%c0_23, %c0_24], %52 {strides = array<i32>} : memref<64x128xf32, #tpu.memory_space<vmem>>, vector<64x128xf32>,
    return
  }
}

</mosaic_0001>

<bundles_post_ra>
// kernel: grand_forward.1
= control target key start
LH: loop header
LB: loop body
LE: loop exit
PB: predicated region body
PF: predicated region fallthrough
CT: control target
= control target key end

     0   :  { %6 = vsyncpa [#allocation3], 0  ;;  %s1689_s6 = smov [#allocation2]   ;;  %s1914_s0 = inlined_call_operand.hbm [shape: f32[160,128], index: 0, kind: input, shape index: {}]   ;;  %s1915_s1 = inlined_call_operand.vmem [shape: f32[64,128], index: 1, kind: output, shape index: {}]  }
   0x1   :  { %s12_s7 = sshll.u32 %s1689_s6, 4  ;;  %s1665_s10 = scalar_lea.hbm %s1914_s0, 2560  ;;  %s13_s7 = int_to_ptr.vmem [resolvable:$true] %s12_s7 }
   0x2   :  { %p1666_p0 = scmp.ne.s32.totalorder %s1914_s0, %s1665_s10  ;;  %p1669_p1 = scmp.lt.u32.totalorder %s1665_s10, %s1914_s0 }
   0x4   :  { %p1671_p2 = pnand %p1669_p1, %p1666_p0 }
   0x6   :  { %1674 = shalt.err (!%p1671_p2)
}
   0x7   :  { %s1675_s15 = scalar_lea.vmem %s13_s7, 2560  ;;  %p1680_p4 = scmp.lt.s32.totalorder %s13_s7, %s13_s7 }
   0x8   :  { %p1676_p3 = scmp.ne.s32.totalorder %s13_s7, %s1675_s15  ;;  %p1681_p5 = scmp.lt.s32.totalorder %s1675_s15, %s1675_s15 }
   0xa   :  { %p1682_p6 = por %p1681_p5, %p1680_p4 }
   0xc   :  { %p1683_p7 = pnand %p1682_p6, %p1676_p3 }
   0xe   :  { %1686 = shalt.err (!%p1683_p7)
}
   0xf   :  { %s1690_s16 = smov 128   ;;  %s1691_s17 = smov 8  }
  0x10   :  { %18 = dma.hbm_to_vmem [thread:$0]  %s1914_s0, 2560, %s13_s7, [#allocation3], %s1690_s16, %s1690_s16, %s1691_s17  }
  0x11   :  { %1687 = dma.done.wait [#allocation3], 2560  }
  0x12   :  { %1688 = vsyncadd [#allocation3], 4294964736  ;;  %v1718_v0 = vld [vmem:[#allocation2] sm:$0xff]  ;;  %v1720_v1 = vld [vmem:[#allocation2 + $0x8] sm:$0xff]  ;;  %s1692_s0 = smov 64   ;;  %vm64_vm0 = vcmask 130048  }
  0x13   :  { %v1722_v2 = vld [vmem:[#allocation2 + $0x10] sm:$0xff]  ;;  %v43_v3 = vpack.c.bf16 %v1720_v1, %v1718_v0  ;;  %v1726_v4 = vld [vmem:[#allocation2 + $0x18] sm:$0xff]  ;;  %v1728_v5 = vld [vmem:[#allocation2 + $0x20] sm:$0xff]  ;;  %s1693_s20 = smov 96   ;;  %vm152_vm1 = vcmask 261120   ;;  %vm246_vm2 = vcmask 64512  }
  0x14   :  { %v1730_v6 = vld [vmem:[#allocation2 + $0x28] sm:$0xff]  ;;  %v1734_v8 = vld [vmem:[#allocation2 + $0x30] sm:$0xff]  ;;  %v1736_v9 = vld [vmem:[#allocation2 + $0x38] sm:$0xff]  ;;  %v44_v11 = vpack.c.bf16 %v1726_v4, %v1722_v2  ;;  %s1694_s21 = smov 120   ;;  %vm368_vm3 = vcmask 523264  }
  0x15   :  { %v45_v7 = vpack.c.bf16 %v1730_v6, %v1728_v5  ;;  %v31_v10 = vld [vmem:[#allocation2 + $0x40] sm:$0xff]  ;;  %56 = vrot.lane.b32.xlu0 %v43_v3, %s1692_s0  ;;  %v32_v12 = vld [vmem:[#allocation2 + $0x48] sm:$0xff]  ;;  %v46_v13 = vpack.c.bf16 %v1736_v9, %v1734_v8  ;;  %v33_v19 = vld [vmem:[#allocation2 + $0x50] sm:$0xff] }
  0x16   :  { %v47_v14 = vpack.c.bf16 %v32_v12, %v31_v10  ;;  %v34_v20 = vld [vmem:[#allocation2 + $0x58] sm:$0xff]  ;;  %v35_v22 = vld [vmem:[#allocation2 + $0x60] sm:$0xff]  ;;  %v36_v23 = vld [vmem:[#allocation2 + $0x68] sm:$0xff] }
  0x17   :  { %60 = vrot.lane.b32.xlu1 %v45_v7, %s1692_s0  ;;  %v146_v21 = vpack.c.bf16 %v34_v20, %v33_v19  ;;  %v147_v24 = vpack.c.bf16 %v36_v23, %v35_v22  ;;  %v1189_v25 = vld [vmem:[#allocation2 + $0x90] ss:$0 sm:$0xff] }
  0x18   :  { %1352 = vmatprep.subr.bf16.mxu0 %v47_v14 }
  0x19   :  { %58 = vrot.lane.b32.xlu0 %v44_v11, %s1692_s0  ;;  %1353 = vmatpush3.bf16.msra.mxu0 %v47_v14 }
  0x1a   :  { %1362 = vmatprep.subr.bf16.mxu1 %v146_v21 }
  0x1b   :  { %62 = vrot.lane.b32.xlu1 %v46_v13, %s1692_s0  ;;  %1363 = vmatpush3.bf16.msra.mxu1 %v146_v21 }
  0x1c   :  { %1364 = vmatprep.subr.bf16.mxu1 %v147_v24 }
  0x1d   :  { %149 = vrot.lane.b32.xlu0 %v1189_v25, %s1693_s20 }
  0x1f   :  { %1365 = vmatpush3.bf16.msra.mxu1 %v147_v24 }
  0x87   :  { %v57_v15 = vpop.permute.xlu0 %56 }
  0x88   :  { %1354 = vmatprep.mubr.msk.bf16.mxu0 %vm64_vm0, %v57_v15 }
  0x89   :  { %v61_v17 = vpop.permute.xlu1 %60 }
  0x8b   :  { %v59_v16 = vpop.permute.xlu0 %58 }
  0x8c   :  { %1355 = vmatmul.mubr.msk.bf16.vlgmr.msra.gmra.mrb[0].mxu0 %vm64_vm0, %v59_v16 }
  0x8d   :  { %1358 = vmatprep.mubr.msk.bf16.mxu0 %vm64_vm0, %v61_v17  ;;  %v63_v18 = vpop.permute.xlu1 %62 }
  0x8f   :  { %v150_v47 = vpop.permute.xlu0 %149 }
  0x94   :  { %1359 = vmatmul.mubr.msk.bf16.gmra.mrb[4].mxu0 %vm64_vm0, %v63_v18 }
 0x15f   :  { %v1356_v26 = vpop.f32.mrb[0].mxu0 }
 0x160   :  { %v111_v27 = vpop.f32.mrb[1].mxu0  ;;  %v120_v29 = vadd.f32 %v1356_v26, %v1189_v25 }
 0x161   :  { %v1357_v28 = vpop.f32.mrb[2].mxu0  ;;  %v112_v32 = vadd.f32 %v1189_v25, %v111_v27 }
 0x162   :  { %v123_v30 = vadd.f32 %v1357_v28, %v1189_v25  ;;  %v114_v31 = vpop.f32.mrb[3].mxu0 }
 0x163   :  { %v115_v33 = vadd.f32 %v1189_v25, %v114_v31 }
 0x164   :  { %v1742_v34 = vpack.c.bf16 %v123_v30, %v120_v29 }
 0x165   :  { %v1744_v35 = vpack.c.bf16 %v115_v33, %v112_v32 }
 0x167   :  { %v1360_v36 = vpop.f32.mrb[4].mxu0  ;;  %1366 = vmatprep.mubr.msk.bf16.mxu1 %vm152_vm1, %v1744_v35 }
 0x168   :  { %v136_v37 = vadd.f32 %v1360_v36, %v1189_v25  ;;  %v127_v38 = vpop.f32.mrb[5].mxu0  ;;  %1367 = vmatmul.mubr.msk.bf16.vlgmr.msra.gmra.mrb[0].mxu1 %vm152_vm1, %v1742_v34 }
 0x169   :  { %v128_v39 = vadd.f32 %v1189_v25, %v127_v38  ;;  %v1361_v40 = vpop.f32.mrb[6].mxu0 }
 0x16a   :  { %v139_v41 = vadd.f32 %v1361_v40, %v1189_v25  ;;  %v130_v42 = vpop.f32.mrb[7].mxu0 }
 0x16b   :  { %v131_v43 = vadd.f32 %v1189_v25, %v130_v42 }
 0x16c   :  { %v1750_v44 = vpack.c.bf16 %v139_v41, %v136_v37 }
 0x16d   :  { %v1752_v45 = vpack.c.bf16 %v131_v43, %v128_v39 }
 0x16f   :  { %1370 = vmatprep.mubr.msk.bf16.mxu1 %vm152_vm1, %v1752_v45 }
 0x170   :  { %1371 = vmatmul.mubr.msk.bf16.gmra.mrb[4].mxu1 %vm152_vm1, %v1750_v44 }
 0x23b   :  { %v1368_v46 = vpop.f32.mrb[0].mxu1 }
 0x23c   :  { %v199_v48 = vpop.f32.mrb[1].mxu1  ;;  %v208_v50 = vadd.f32 %v1368_v46, %v150_v47 }
 0x23d   :  { %v1369_v49 = vpop.f32.mrb[2].mxu1  ;;  %v200_v53 = vadd.f32 %v199_v48, %v150_v47 }
 0x23e   :  { %v211_v51 = vadd.f32 %v1369_v49, %v150_v47  ;;  %v202_v52 = vpop.f32.mrb[3].mxu1 }
 0x23f   :  { %v203_v54 = vadd.f32 %v202_v52, %v150_v47 }
 0x240   :  { %v231_v55 = vpack.c.bf16 %v211_v51, %v208_v50 }
 0x241   :  { %v230_v56 = vpack.c.bf16 %v203_v54, %v200_v53 }
 0x242   :  { %240 = vrot.lane.b32.xlu0 %v231_v55, %s1694_s21 }
 0x243   :  { %v1372_v57 = vpop.f32.mrb[4].mxu1  ;;  %238 = vrot.lane.b32.xlu1 %v230_v56, %s1694_s21  ;;  %1382 = vmatprep.mubr.msk.bf16.mxu0 %vm246_vm2, %v230_v56 }
 0x244   :  { %v215_v58 = vpop.f32.mrb[5].mxu1  ;;  %v224_v60 = vadd.f32 %v1372_v57, %v150_v47 }
 0x245   :  { %v1373_v59 = vpop.f32.mrb[6].mxu1  ;;  %v216_v63 = vadd.f32 %v215_v58, %v150_v47 }
 0x246   :  { %v227_v61 = vadd.f32 %v1373_v59, %v150_v47  ;;  %v218_v62 = vpop.f32.mrb[7].mxu1 }
 0x247   :  { %v219_v3 = vadd.f32 %v218_v62, %v150_v47 }
 0x248   :  { %v233_v7 = vpack.c.bf16 %v227_v61, %v224_v60 }
 0x249   :  { %v232_v10 = vpack.c.bf16 %v219_v3, %v216_v63 }
 0x24a   :  { %244 = vrot.lane.b32.xlu0 %v233_v7, %s1694_s21 }
 0x24b   :  { %242 = vrot.lane.b32.xlu1 %v232_v10, %s1694_s21 }
 0x2b4   :  { %v241_v13 = vpop.permute.xlu0 %240 }
 0x2b5   :  { %v239_v11 = vpop.permute.xlu1 %238  ;;  %v263_v14 = vsel %vm246_vm2, %v241_v13, 0 }
 0x2b6   :  { %v260_v12 = vsel %vm246_vm2, %v239_v11, 0  ;;  %1622 = vmatprep.subr.msk.bf16.mxu0 %vm246_vm2, %v239_v11 }
 0x2b7   :  { %1375 = vmatpush3.bf16.xpose.msra.mxu0 %v260_v12 }
 0x2b8   :  { %1623 = vmatprep.subr.msk.bf16.mxu0 %vm246_vm2, %v241_v13 }
 0x2bc   :  { %v245_v17 = vpop.permute.xlu0 %244 }
 0x2bd   :  { %v243_v15 = vpop.permute.xlu1 %242  ;;  %v269_v18 = vsel %vm246_vm2, %v245_v17, 0 }
 0x2be   :  { %v266_v16 = vsel %vm246_vm2, %v243_v15, 0 }
 0x2bf   :  { %1377 = vmatpush3.bf16.xpose.msra.mxu0 %v263_v14 }
 0x2c0   :  { %1624 = vmatprep.subr.msk.bf16.mxu0 %vm246_vm2, %v243_v15 }
 0x2c7   :  { %1379 = vmatpush3.bf16.xpose.msra.mxu0 %v266_v16 }
 0x2c8   :  { %1625 = vmatprep.subr.msk.bf16.mxu0 %vm246_vm2, %v245_v17 }
 0x2cf   :  { %1381 = vmatpush3.bf16.xpose.msra.mxu0 %v269_v18 }
 0x2d6   :  { %1383 = vmatmul.mubr.msk.bf16.vlgmr.msra.gmra.mrb[8].mxu0 %vm246_vm2, %v231_v55 }
 0x2d7   :  { %1386 = vmatprep.mubr.msk.bf16.mxu0 %vm246_vm2, %v232_v10  ;;  %v433_v10 = vlaneseq }
 0x2d9   :  { %v434_v13 = vshrl.u32 %v433_v10, 7  ;;  %v1818_v16 = vand.u32 127, %v433_v10 }
 0x2db   :  { %v435_v18 = vadd.s32 8, %v434_v13  ;;  %vm444_vm10 = vcmp.eq.s32.totalorder %v434_v13, %v1818_v16 }
 0x2dd   :  { %vm445_vm11 = vcmp.eq.s32.totalorder %v435_v18, %v1818_v16 }
 0x2de   :  { %1387 = vmatmul.mubr.msk.bf16.gmra.mrb[12].mxu0 %vm246_vm2, %v233_v7 }
 0x3a9   :  { %v1384_v19 = vpop.f32.mrb[8].mxu0 }
 0x3aa   :  { %v338_v20 = vmul.f32 %v1384_v19, %v1722_v2  ;;  %v305_v21 = vpop.f32.mrb[9].mxu0 }
 0x3ab   :  { %v336_v22 = vmul.f32 %v305_v21, %v1718_v0  ;;  %v1385_v23 = vpop.f32.mrb[10].mxu0 }
 0x3ac   :  { %v348_v24 = vmul.f32 1.442695, %v338_v20  ;;  %v339_v25 = vmul.f32 %v1385_v23, %v1726_v4  ;;  %v308_v26 = vpop.f32.mrb[11].mxu0 }
 0x3ad   :  { %v344_v27 = vmul.f32 1.442695, %v336_v22  ;;  %v337_v28 = vmul.f32 %v308_v26, %v1720_v1 }
 0x3ae   :  { %1633 = vpow2.f32 %v348_v24  ;;  %v350_v29 = vmul.f32 1.442695, %v339_v25  ;;  %v436_v24 = vadd.s32 16, %v434_v13  ;;  %v437_v25 = vadd.s32 24, %v434_v13 }
 0x3af   :  { %1635 = vpow2.f32 %v344_v27  ;;  %v346_v30 = vmul.f32 1.442695, %v337_v28 }
 0x3b0   :  { %1637 = vpow2.f32 %v350_v29  ;;  %vm446_vm14 = vcmp.eq.s32.totalorder %v436_v24, %v1818_v16  ;;  %vm447_vm15 = vcmp.eq.s32.totalorder %v437_v25, %v1818_v16 }
 0x3b1   :  { %1639 = vpow2.f32 %v346_v30  ;;  %v1388_v31 = vpop.f32.mrb[12].mxu0  ;;  %v1695_v30 = vmov 0.0  }
 0x3b2   :  { %v342_v32 = vmul.f32 %v1388_v31, %v1734_v8  ;;  %v321_v33 = vpop.f32.mrb[13].mxu0  ;;  %v452_v31 = vsel %vm444_vm10, 0.9, %v1695_v30 }
 0x3b3   :  { %v340_v36 = vmul.f32 %v321_v33, %v1728_v5  ;;  %v1389_v37 = vpop.f32.mrb[14].mxu0 }
 0x3b4   :  { %v356_v38 = vmul.f32 1.442695, %v342_v32  ;;  %v343_v39 = vmul.f32 %v1389_v37, %v1736_v9  ;;  %v324_v40 = vpop.f32.mrb[15].mxu0  ;;  %v453_v32 = vsel %vm445_vm11, 0.9, %v1695_v30 }
 0x3b5   :  { %v352_v41 = vmul.f32 1.442695, %v340_v36  ;;  %v341_v42 = vmul.f32 %v324_v40, %v1730_v6  ;;  %v438_v40 = vadd.s32 32, %v434_v13 }
 0x3b6   :  { %1641 = vpow2.f32 %v356_v38  ;;  %v358_v43 = vmul.f32 1.442695, %v343_v39 }
 0x3b7   :  { %1643 = vpow2.f32 %v352_v41  ;;  %v354_v46 = vmul.f32 1.442695, %v341_v42  ;;  %vm448_vm0 = vcmp.eq.s32.totalorder %v438_v40, %v1818_v16 }
 0x3b8   :  { %v1634_v47 = vpop.eup %1633  ;;  %1645 = vpow2.f32 %v358_v43 }
 0x3b9   :  { %v1636_v48 = vpop.eup %1635  ;;  %1647 = vpow2.f32 %v354_v46  ;;  %v1792_v56 = vmul.f32 %v1634_v47, %v1722_v2  ;;  %v439_v47 = vadd.s32 40, %v434_v13 }
 0x3ba   :  { %v1638_v49 = vpop.eup %1637  ;;  %v1779_v50 = vmul.f32 %v1636_v48, %v1718_v0 }
 0x3bb   :  { %v1640_v51 = vpop.eup %1639  ;;  %v1787_v54 = vmul.f32 %v1638_v49, %v1726_v4  ;;  %vm449_vm2 = vcmp.eq.s32.totalorder %v439_v47, %v1818_v16 }
 0x3bc   :  { %v369_v52 = vsel %vm368_vm3, %v1779_v50, 0.0  ;;  %v1784_v53 = vmul.f32 %v1640_v51, %v1720_v1  ;;  %v375_v1 = vsel %vm368_vm3, %v1792_v56, 0.0  ;;  %v454_v51 = vsel %vm446_vm14, 0.9, %v1695_v30 }
 0x3bd   :  { %370 = vadd.xlane.f32.xlu1 %v369_v52  ;;  %v378_v57 = vsel %vm368_vm3, %v1787_v54, 0.0  ;;  %v455_v52 = vsel %vm447_vm15, 0.9, %v1695_v30 }
 0x3be   :  { %v372_v55 = vsel %vm368_vm3, %v1784_v53, 0.0 }
 0x3bf   :  { %373 = vadd.xlane.f32.xlu0 %v372_v55 }
 0x3c0   :  { %v1642_v0 = vpop.eup %1641 }
 0x3c1   :  { %v1644_v58 = vpop.eup %1643  ;;  %379 = vadd.xlane.f32.xlu1 %v378_v57  ;;  %v1809_v63 = vmul.f32 %v1642_v0, %v1734_v8  ;;  %v440_v57 = vadd.s32 48, %v434_v13 }
 0x3c2   :  { %v1646_v59 = vpop.eup %1645  ;;  %v1799_v4 = vmul.f32 %v1644_v58, %v1728_v5  ;;  %v441_v58 = vadd.s32 56, %v434_v13 }
 0x3c3   :  { %v1648_v60 = vpop.eup %1647  ;;  %376 = vadd.xlane.f32.xlu0 %v375_v1  ;;  %v1812_v3 = vmul.f32 %v1646_v59, %v1736_v9  ;;  %v387_v5 = vsel %vm368_vm3, %v1809_v63, 0.0 }
 0x3c4   :  { %v1802_v61 = vmul.f32 %v1648_v60, %v1730_v6  ;;  %v381_v2 = vsel %vm368_vm3, %v1799_v4, 0.0 }
 0x3c5   :  { %v390_v6 = vsel %vm368_vm3, %v1812_v3, 0.0 }
 0x3c6   :  { %v384_v62 = vsel %vm368_vm3, %v1802_v61, 0.0 }
 0x3c7   :  { %382 = vadd.xlane.f32.xlu0 %v381_v2  ;;  %385 = vadd.xlane.f32.xlu1 %v384_v62  ;;  %v456_v62 = vsel %vm448_vm0, 0.9, %v1695_v30 }
 0x3cb   :  { %388 = vadd.xlane.f32.xlu0 %v387_v5  ;;  %391 = vadd.xlane.f32.xlu1 %v390_v6 }
 0x44a   :  { %v371_v7 = vpop.xlane.xlu1 %370 }
 0x44b   :  { %vm393_vm4 = vcmp.eq.f32.partialorder %v371_v7, 0.0 }
 0x44c   :  { %v401_v11 = vsel %vm393_vm4, 1.0, %v371_v7  ;;  %v374_v12 = vpop.xlane.xlu0 %373  ;;  %vm450_vm4 = vcmp.eq.s32.totalorder %v440_v57, %v1818_v16  ;;  %v38_v57 = vld [vmem:[#allocation2 + $0x78] sm:$0xff] }
 0x44d   :  { %1649 = vrcp.f32 %v401_v11  ;;  %vm394_vm5 = vcmp.eq.f32.partialorder %v374_v12, 0.0 }
 0x44e   :  { %v402_v8 = vsel %vm394_vm5, 1.0, %v374_v12  ;;  %v380_v9 = vpop.xlane.xlu1 %379  ;;  %vm451_vm5 = vcmp.eq.s32.totalorder %v441_v58, %v1818_v16 }
 0x44f   :  { %1651 = vrcp.f32 %v402_v8  ;;  %vm396_vm6 = vcmp.eq.f32.partialorder %v380_v9, 0.0 }
 0x450   :  { %v404_v14 = vsel %vm396_vm6, 1.0, %v380_v9  ;;  %v377_v15 = vpop.xlane.xlu0 %376 }
 0x451   :  { %1653 = vrcp.f32 %v404_v14  ;;  %vm395_vm7 = vcmp.eq.f32.partialorder %v377_v15, 0.0  ;;  %v458_v14 = vsel %vm450_vm4, 0.9, %v1695_v30 }
 0x452   :  { %v403_v17 = vsel %vm395_vm7, 1.0, %v377_v15 }
 0x453   :  { %1655 = vrcp.f32 %v403_v17 }
 0x454   :  { %v383_v19 = vpop.xlane.xlu0 %382  ;;  %v386_v20 = vpop.xlane.xlu1 %385 }
 0x455   :  { %vm397_vm8 = vcmp.eq.f32.partialorder %v383_v19, 0.0  ;;  %vm398_vm9 = vcmp.eq.f32.partialorder %v386_v20, 0.0 }
 0x456   :  { %v405_v21 = vsel %vm397_vm8, 1.0, %v383_v19  ;;  %v406_v22 = vsel %vm398_vm9, 1.0, %v386_v20 }
 0x457   :  { %v1650_v23 = vpop.eup %1649  ;;  %1657 = vrcp.f32 %v405_v21 }
 0x458   :  { %v410_v26 = vmul.f32 0.1, %v1650_v23  ;;  %1659 = vrcp.f32 %v406_v22  ;;  %v389_v27 = vpop.xlane.xlu0 %388  ;;  %v392_v28 = vpop.xlane.xlu1 %391 }
 0x459   :  { %v1652_v29 = vpop.eup %1651  ;;  %vm399_vm12 = vcmp.eq.f32.partialorder %v389_v27, 0.0  ;;  %vm400_vm13 = vcmp.eq.f32.partialorder %v392_v28, 0.0 }
 0x45a   :  { %v425_v33 = vmul.f32 %v410_v26, %v1779_v50  ;;  %v412_v36 = vmul.f32 0.1, %v1652_v29  ;;  %v407_v37 = vsel %vm399_vm12, 1.0, %v389_v27  ;;  %v408_v38 = vsel %vm400_vm13, 1.0, %v392_v28 }
 0x45b   :  { %v1654_v39 = vpop.eup %1653  ;;  %1661 = vrcp.f32 %v407_v37 }
 0x45c   :  { %v426_v41 = vmul.f32 %v412_v36, %v1784_v53  ;;  %v416_v42 = vmul.f32 0.1, %v1654_v39  ;;  %1663 = vrcp.f32 %v408_v38  ;;  %v460_v43 = vadd.f32 %v452_v31, %v425_v33 }
 0x45d   :  { %v1656_v46 = vpop.eup %1655 }
 0x45e   :  { %v428_v48 = vmul.f32 %v416_v42, %v1787_v54  ;;  %v414_v49 = vmul.f32 0.1, %v1656_v46  ;;  %1406 = vmatprep.mubr.msk.f32.mxu1 %vm368_vm3, %v460_v43  ;;  %v461_v50 = vadd.f32 %v453_v32, %v426_v41 }
 0x460   :  { %v427_v55 = vmul.f32 %v414_v49, %v1792_v56  ;;  %v1542_v0 = vpack.c.bf16 %v461_v50, %v460_v43  ;;  %v463_v60 = vadd.f32 %v455_v52, %v428_v48  ;;  %v457_v56 = vsel %vm449_vm2, 0.9, %v1695_v30 }
 0x461   :  { %v1658_v53 = vpop.eup %1657 }
 0x462   :  { %v1660_v59 = vpop.eup %1659  ;;  %v418_v1 = vmul.f32 0.1, %v1658_v53  ;;  %1543 = vmatprep.subr.bf16.mxu1 %v1542_v0  ;;  %v462_v54 = vadd.f32 %v454_v51, %v427_v55 }
 0x463   :  { %v420_v2 = vmul.f32 0.1, %v1660_v59  ;;  %1545 = vmatpush3.bf16.msra.mxu1 %v1542_v0  ;;  %v37_v0 = vld [vmem:[#allocation2 + $0x70] sm:$0xff] }
 0x464   :  { %v429_v5 = vmul.f32 %v418_v1, %v1799_v4  ;;  %v1546_v6 = vpack.c.bf16 %v463_v60, %v462_v54  ;;  %v459_v4 = vsel %vm451_vm5, 0.9, %v1695_v30  ;;  %v1093_v53 = vpack.c.bf16 %v38_v57, %v37_v0 }
 0x465   :  { %v1662_v7 = vpop.eup %1661  ;;  %v430_v10 = vmul.f32 %v420_v2, %v1802_v61 }
 0x466   :  { %v1664_v11 = vpop.eup %1663  ;;  %v422_v12 = vmul.f32 0.1, %v1662_v7  ;;  %1547 = vmatprep.subr.bf16.mxu1 %v1546_v6  ;;  %v464_v8 = vadd.f32 %v456_v62, %v429_v5 }
 0x467   :  { %v424_v9 = vmul.f32 0.1, %v1664_v11  ;;  %1549 = vmatpush3.bf16.msra.mxu1 %v1546_v6  ;;  %v465_v13 = vadd.f32 %v457_v56, %v430_v10  ;;  %v39_v6 = vld [vmem:[#allocation2 + $0x80] sm:$0xff]  ;;  %v40_v56 = vld [vmem:[#allocation2 + $0x88] sm:$0xff] }
 0x468   :  { %v431_v15 = vmul.f32 %v422_v12, %v1809_v63  ;;  %v1094_v7 = vpack.c.bf16 %v40_v56, %v39_v6 }
 0x469   :  { %v432_v17 = vmul.f32 %v424_v9, %v1812_v3  ;;  %v1550_v18 = vpack.c.bf16 %v465_v13, %v464_v8 }
 0x46a   :  { %v466_v19 = vadd.f32 %v458_v14, %v431_v15 }
 0x46b   :  { %1551 = vmatprep.subr.bf16.mxu1 %v1550_v18  ;;  %v467_v20 = vadd.f32 %v459_v4, %v432_v17 }
 0x46c   :  { %1553 = vmatpush3.bf16.msra.mxu1 %v1550_v18 }
 0x46d   :  { %v1554_v61 = vpack.c.bf16 %v467_v20, %v466_v19 }
 0x46f   :  { %1555 = vmatprep.subr.bf16.mxu1 %v1554_v61 }
 0x470   :  { %1557 = vmatpush3.bf16.msra.mxu1 %v1554_v61 }
 0x471   :  { %1559 = vmatprep.subr.bf16.mxu1 %v1744_v35 }
 0x473   :  { %1407 = vmatmul.mubr.msk.f32.vlgmr.msra.gmra.mrb[8].mxu1 %vm368_vm3, %v461_v50 }
 0x474   :  { %1409 = vmatprep.mubr.msk.f32.mxu1 %vm368_vm3, %v462_v54  ;;  %1561 = vmatpush3.bf16.msra.mxu1 %v1744_v35 }
 0x475   :  { %1563 = vmatprep.subr.bf16.mxu1 %v1742_v34 }
 0x477   :  { %1410 = vmatmul.mubr.msk.f32.gmra.mrb[10].mxu1 %vm368_vm3, %v463_v60 }
 0x478   :  { %1412 = vmatprep.mubr.msk.f32.mxu1 %vm368_vm3, %v464_v8  ;;  %1565 = vmatpush3.bf16.msra.mxu1 %v1742_v34 }
 0x479   :  { %1567 = vmatprep.subr.bf16.mxu1 %v1752_v45 }
 0x47b   :  { %1413 = vmatmul.mubr.msk.f32.gmra.mrb[12].mxu1 %vm368_vm3, %v465_v13 }
 0x47c   :  { %1415 = vmatprep.mubr.msk.f32.mxu1 %vm368_vm3, %v466_v19  ;;  %1569 = vmatpush3.bf16.msra.mxu1 %v1752_v45 }
 0x47d   :  { %1571 = vmatprep.subr.bf16.mxu1 %v1750_v44 }
 0x47f   :  { %1416 = vmatmul.mubr.msk.f32.gmra.mrb[14].mxu1 %vm368_vm3, %v467_v20  ;;  %v1242_v20 = vld [vmem:[#allocation2 + $0x98] ss:$0 sm:$0xff] }
 0x480   :  { %1573 = vmatpush3.bf16.msra.mxu1 %v1750_v44 }
 0x546   :  { %v1408_v35 = vpop.f32.mrb[8].mxu1 }
 0x547   :  { %v558_v63 = vpop.f32.mrb[9].mxu1 }
 0x548   :  { %v1574_v3 = vpack.c.bf16 %v1408_v35, %v558_v63  ;;  %1434 = vmatprep.mubr.msk.f32.mxu1 %vm368_vm3, %v558_v63  ;;  %1462 = vmatprep.mubr.msk.f32.mxu0 %vm368_vm3, %v558_v63 }
 0x549   :  { %1435 = vmatmul.mubr.msk.f32.vlgmr.msra.gmra.mrb[16].mxu1 %vm368_vm3, %v1408_v35 }
 0x54a   :  { %v1411_v34 = vpop.f32.mrb[10].mxu1  ;;  %1575 = vmatprep.subr.bf16.mxu0 %v1574_v3 }
 0x54b   :  { %v568_v16 = vpop.f32.mrb[11].mxu1  ;;  %1577 = vmatpush3.bf16.msra.mxu0 %v1574_v3 }
 0x54c   :  { %v1578_v45 = vpack.c.bf16 %v1411_v34, %v568_v16  ;;  %1437 = vmatprep.mubr.msk.f32.mxu1 %vm368_vm3, %v568_v16 }
 0x54d   :  { %1438 = vmatmul.mubr.msk.f32.gmra.mrb[18].mxu1 %vm368_vm3, %v1411_v34 }
 0x54e   :  { %v1414_v21 = vpop.f32.mrb[12].mxu1  ;;  %1579 = vmatprep.subr.bf16.mxu0 %v1578_v45 }
 0x54f   :  { %v578_v44 = vpop.f32.mrb[13].mxu1  ;;  %1581 = vmatpush3.bf16.msra.mxu0 %v1578_v45 }
 0x550   :  { %v1582_v22 = vpack.c.bf16 %v1414_v21, %v578_v44  ;;  %1440 = vmatprep.mubr.msk.f32.mxu1 %vm368_vm3, %v578_v44 }
 0x551   :  { %1441 = vmatmul.mubr.msk.f32.gmra.mrb[20].mxu1 %vm368_vm3, %v1414_v21 }
 0x552   :  { %v1417_v23 = vpop.f32.mrb[14].mxu1  ;;  %1583 = vmatprep.subr.bf16.mxu0 %v1582_v22 }
 0x553   :  { %v588_v24 = vpop.f32.mrb[15].mxu1  ;;  %1585 = vmatpush3.bf16.msra.mxu0 %v1582_v22 }
 0x554   :  { %v1586_v25 = vpack.c.bf16 %v1417_v23, %v588_v24  ;;  %1443 = vmatprep.mubr.msk.f32.mxu1 %vm368_vm3, %v588_v24 }
 0x555   :  { %1444 = vmatmul.mubr.msk.f32.gmra.mrb[22].mxu1 %vm368_vm3, %v1417_v23 }
 0x556   :  { %1587 = vmatprep.subr.bf16.mxu0 %v1586_v25 }
 0x557   :  { %1589 = vmatpush3.bf16.msra.mxu0 %v1586_v25 }
 0x55a   :  { %1463 = vmatmul.mubr.msk.f32.vlgmr.msra.gmra.mrb[16].mxu0 %vm368_vm3, %v1408_v35 }
 0x55b   :  { %1465 = vmatprep.mubr.msk.f32.mxu0 %vm368_vm3, %v568_v16 }
 0x55e   :  { %1466 = vmatmul.mubr.msk.f32.gmra.mrb[18].mxu0 %vm368_vm3, %v1411_v34 }
 0x55f   :  { %1468 = vmatprep.mubr.msk.f32.mxu0 %vm368_vm3, %v578_v44 }
 0x562   :  { %1469 = vmatmul.mubr.msk.f32.gmra.mrb[20].mxu0 %vm368_vm3, %v1414_v21 }
 0x563   :  { %1471 = vmatprep.mubr.msk.f32.mxu0 %vm368_vm3, %v588_v24 }
 0x566   :  { %1472 = vmatmul.mubr.msk.f32.gmra.mrb[22].mxu0 %vm368_vm3, %v1417_v23 }
 0x61c   :  { %v1436_v26 = vpop.f32.mrb[16].mxu1 }
 0x61d   :  { %v687_v27 = vpop.f32.mrb[17].mxu1 }
 0x61e   :  { %v1606_v28 = vpack.c.bf16 %v1436_v26, %v687_v27 }
 0x620   :  { %v1439_v29 = vpop.f32.mrb[18].mxu1  ;;  %1607 = vmatprep.subr.bf16.mxu0 %v1606_v28 }
 0x621   :  { %v697_v30 = vpop.f32.mrb[19].mxu1  ;;  %1609 = vmatpush3.bf16.msra.mxu0 %v1606_v28 }
 0x622   :  { %v1610_v31 = vpack.c.bf16 %v1439_v29, %v697_v30 }
 0x624   :  { %v1442_v32 = vpop.f32.mrb[20].mxu1  ;;  %1611 = vmatprep.subr.bf16.mxu0 %v1610_v31 }
 0x625   :  { %v707_v33 = vpop.f32.mrb[21].mxu1  ;;  %1613 = vmatpush3.bf16.msra.mxu0 %v1610_v31 }
 0x626   :  { %v1614_v36 = vpack.c.bf16 %v1442_v32, %v707_v33 }
 0x628   :  { %v1445_v37 = vpop.f32.mrb[22].mxu1  ;;  %1615 = vmatprep.subr.bf16.mxu0 %v1614_v36 }
 0x629   :  { %v717_v38 = vpop.f32.mrb[23].mxu1  ;;  %1617 = vmatpush3.bf16.msra.mxu0 %v1614_v36 }
 0x62a   :  { %v1618_v39 = vpack.c.bf16 %v1445_v37, %v717_v38 }
 0x62c   :  { %1619 = vmatprep.subr.bf16.mxu0 %v1618_v39 }
 0x62d   :  { %v1464_v40 = vpop.f32.mrb[16].mxu0  ;;  %1621 = vmatpush3.bf16.msra.mxu0 %v1618_v39 }
 0x62e   :  { %v792_v41 = vpop.f32.mrb[17].mxu0 }
 0x62f   :  { %v1590_v42 = vpack.c.bf16 %v1464_v40, %v792_v41  ;;  %1490 = vmatprep.mubr.msk.f32.mxu1 %vm368_vm3, %v792_v41 }
 0x631   :  { %v1467_v43 = vpop.f32.mrb[18].mxu0  ;;  %1591 = vmatprep.subr.bf16.mxu1 %v1590_v42 }
 0x632   :  { %v802_v46 = vpop.f32.mrb[19].mxu0  ;;  %1593 = vmatpush3.bf16.msra.mxu1 %v1590_v42 }
 0x633   :  { %v1594_v47 = vpack.c.bf16 %v1467_v43, %v802_v46 }
 0x635   :  { %v1470_v48 = vpop.f32.mrb[20].mxu0  ;;  %1595 = vmatprep.subr.bf16.mxu1 %v1594_v47 }
 0x636   :  { %v812_v49 = vpop.f32.mrb[21].mxu0  ;;  %1597 = vmatpush3.bf16.msra.mxu1 %v1594_v47 }
 0x637   :  { %v1598_v50 = vpack.c.bf16 %v1470_v48, %v812_v49 }
 0x639   :  { %v1473_v51 = vpop.f32.mrb[22].mxu0  ;;  %1599 = vmatprep.subr.bf16.mxu1 %v1598_v50 }
 0x63a   :  { %v822_v52 = vpop.f32.mrb[23].mxu0  ;;  %1601 = vmatpush3.bf16.msra.mxu1 %v1598_v50 }
 0x63b   :  { %v1602_v55 = vpack.c.bf16 %v1473_v51, %v822_v52 }
 0x63d   :  { %1603 = vmatprep.subr.bf16.mxu1 %v1602_v55 }
 0x63e   :  { %1605 = vmatpush3.bf16.msra.mxu1 %v1602_v55 }
 0x63f   :  { %1530 = vmatprep.subr.bf16.mxu1 %v1093_v53 }
 0x641   :  { %1491 = vmatmul.mubr.msk.f32.vlgmr.msra.gmra.mrb[24].mxu1 %vm368_vm3, %v1464_v40 }
 0x642   :  { %1493 = vmatprep.mubr.msk.f32.mxu1 %vm368_vm3, %v802_v46  ;;  %1531 = vmatpush3.bf16.msra.mxu1 %v1093_v53 }
 0x643   :  { %1532 = vmatprep.subr.bf16.mxu1 %v1094_v7 }
 0x645   :  { %1494 = vmatmul.mubr.msk.f32.gmra.mrb[26].mxu1 %vm368_vm3, %v1467_v43 }
 0x646   :  { %1496 = vmatprep.mubr.msk.f32.mxu1 %vm368_vm3, %v812_v49  ;;  %1533 = vmatpush3.bf16.msra.mxu1 %v1094_v7 }
 0x649   :  { %1497 = vmatmul.mubr.msk.f32.gmra.mrb[28].mxu1 %vm368_vm3, %v1470_v48 }
 0x64a   :  { %1499 = vmatprep.mubr.msk.f32.mxu1 %vm368_vm3, %v822_v52 }
 0x64d   :  { %1500 = vmatmul.mubr.msk.f32.gmra.mrb[30].mxu1 %vm368_vm3, %v1473_v51 }
 0x714   :  { %v1492_v58 = vpop.f32.mrb[24].mxu1 }
 0x715   :  { %v921_v59 = vpop.f32.mrb[25].mxu1 }
 0x716   :  { %1518 = vmatprep.mubr.msk.f32.mxu0 %vm368_vm3, %v921_v59 }
 0x717   :  { %1519 = vmatmul.mubr.msk.f32.vlgmr.msra.gmra.mrb[24].mxu0 %vm368_vm3, %v1492_v58 }
 0x718   :  { %v1495_v1 = vpop.f32.mrb[26].mxu1 }
 0x719   :  { %v931_v54 = vpop.f32.mrb[27].mxu1 }
 0x71a   :  { %1521 = vmatprep.mubr.msk.f32.mxu0 %vm368_vm3, %v931_v54 }
 0x71b   :  { %1522 = vmatmul.mubr.msk.f32.gmra.mrb[26].mxu0 %vm368_vm3, %v1495_v1 }
 0x71c   :  { %v1498_v60 = vpop.f32.mrb[28].mxu1 }
 0x71d   :  { %v941_v2 = vpop.f32.mrb[29].mxu1 }
 0x71e   :  { %1524 = vmatprep.mubr.msk.f32.mxu0 %vm368_vm3, %v941_v2 }
 0x71f   :  { %1525 = vmatmul.mubr.msk.f32.gmra.mrb[28].mxu0 %vm368_vm3, %v1498_v60 }
 0x720   :  { %v1501_v62 = vpop.f32.mrb[30].mxu1 }
 0x721   :  { %v951_v5 = vpop.f32.mrb[31].mxu1 }
 0x722   :  { %1527 = vmatprep.mubr.msk.f32.mxu0 %vm368_vm3, %v951_v5 }
 0x723   :  { %1528 = vmatmul.mubr.msk.f32.gmra.mrb[30].mxu0 %vm368_vm3, %v1501_v62 }
 0x7ea   :  { %v1520_v10 = vpop.f32.mrb[24].mxu0 }
 0x7eb   :  { %v1050_v11 = vpop.f32.mrb[25].mxu0 }
 0x7ec   :  { %v1089_v12 = vpack.c.bf16 %v1520_v10, %v1050_v11 }
 0x7ee   :  { %v1523_v8 = vpop.f32.mrb[26].mxu0  ;;  %1534 = vmatprep.mubr.msk.bf16.mxu1 %vm152_vm1, %v1089_v12 }
 0x7ef   :  { %v1060_v9 = vpop.f32.mrb[27].mxu0 }
 0x7f0   :  { %v1090_v13 = vpack.c.bf16 %v1523_v8, %v1060_v9 }
 0x7f2   :  { %v1526_v14 = vpop.f32.mrb[28].mxu0  ;;  %1535 = vmatmul.mubr.msk.bf16.vlgmr.msra.gmra.mrb[32].mxu1 %vm152_vm1, %v1090_v13 }
 0x7f3   :  { %v1070_v15 = vpop.f32.mrb[29].mxu0 }
 0x7f4   :  { %v1091_v4 = vpack.c.bf16 %v1526_v14, %v1070_v15 }
 0x7f6   :  { %v1529_v17 = vpop.f32.mrb[30].mxu0  ;;  %1538 = vmatprep.mubr.msk.bf16.mxu1 %vm152_vm1, %v1091_v4 }
 0x7f7   :  { %v1080_v18 = vpop.f32.mrb[31].mxu0 }
 0x7f8   :  { %v1092_v19 = vpack.c.bf16 %v1529_v17, %v1080_v18 }
 0x7fa   :  { %1539 = vmatmul.mubr.msk.bf16.gmra.mrb[36].mxu1 %vm152_vm1, %v1092_v19 }
 0x8c5   :  { %v1536_v61 = vpop.f32.mrb[32].mxu1 }
 0x8c6   :  { %v1154_v35 = vadd.f32 %v1536_v61, %v1242_v20  ;;  %v1145_v63 = vpop.f32.mrb[33].mxu1 }
 0x8c7   :  { %v1146_v3 = vadd.f32 %v1242_v20, %v1145_v63  ;;  %v1537_v34 = vpop.f32.mrb[34].mxu1 }
 0x8c8   :  { %1178 = vst [vmem:[%s1915_s1 + $0x10] sm:$0xff] %v1154_v35  ;;  %v1157_v16 = vadd.f32 %v1537_v34, %v1242_v20  ;;  %v1148_v45 = vpop.f32.mrb[35].mxu1 }
 0x8c9   :  { %1176 = vst [vmem:[%s1915_s1] sm:$0xff] %v1146_v3  ;;  %v1149_v21 = vadd.f32 %v1242_v20, %v1148_v45 }
 0x8ca   :  { %1179 = vst [vmem:[%s1915_s1 + $0x18] sm:$0xff] %v1157_v16 }
 0x8cb   :  { %1177 = vst [vmem:[%s1915_s1 + $0x8] sm:$0xff] %v1149_v21 }
 0x8cd   :  { %v1540_v44 = vpop.f32.mrb[36].mxu1 }
 0x8ce   :  { %v1170_v22 = vadd.f32 %v1540_v44, %v1242_v20  ;;  %v1161_v23 = vpop.f32.mrb[37].mxu1 }
 0x8cf   :  { %v1162_v24 = vadd.f32 %v1242_v20, %v1161_v23  ;;  %v1541_v25 = vpop.f32.mrb[38].mxu1 }
 0x8d0   :  { %1182 = vst [vmem:[%s1915_s1 + $0x30] sm:$0xff] %v1170_v22  ;;  %v1173_v26 = vadd.f32 %v1541_v25, %v1242_v20  ;;  %v1164_v27 = vpop.f32.mrb[39].mxu1 }
 0x8d1   :  { %1180 = vst [vmem:[%s1915_s1 + $0x20] sm:$0xff] %v1162_v24  ;;  %v1165_v28 = vadd.f32 %v1242_v20, %v1164_v27 }
 0x8d2   :  { %1183 = vst [vmem:[%s1915_s1 + $0x38] sm:$0xff] %v1173_v26 }
 0x8d3   :  { %1181 = vst [vmem:[%s1915_s1 + $0x28] sm:$0xff] %v1165_v28 }
 0x8d4   :  { %1188 = vsyncpa [#allocation3], 1 }

</bundles_post_ra>
